<compile_context>
chip_gen: v7x
topology: tpu7x:2x2x1
jax: 0.10.0
libtpu: 0.0.40
codegen_flags: <defaults>
</compile_context>

<pallas_src>
import jax
import jax.numpy as jnp
from jax.experimental import pallas as pl
from jax.experimental.pallas import tpu as pltpu


def _direction_scale_kernel(x_ref, wc_ref, bc_ref, u_ref, o_ref):
    # x_ref : (1, C, THW)       HW tile of one batch element (channels on sublanes)
    # wc_ref: (planes, C)       conv1x1 weight (PyTorch (out, in) layout)
    # bc_ref: (planes, 1)       conv1x1 bias (broadcast along lanes)
    # u_ref : (1, planes, 1)    precomputed channel-attention gate for this batch elem
    # o_ref : (1, planes, THW)
    x = x_ref[0]                                               # (C, THW)
    conv = jnp.dot(wc_ref[...], x,
                   preferred_element_type=jnp.float32)         # (planes, THW)
    conv = conv + bc_ref[...]                                  # bias along sublanes
    o_ref[0] = (conv * u_ref[0]).astype(o_ref.dtype)           # gate, lane-dense store


def _pick_hw_tile(hw_padded, c_in, planes, byte_budget):
    """Largest multiple of 128 dividing hw_padded whose per-step x+out bytes fit
    the budget.  hw_padded must already be a multiple of 128."""
    bytes_per_col = (c_in + planes) * 4                        # one f32 x col + out col
    thw_max = max(128, (byte_budget // bytes_per_col) // 128 * 128)
    t = min(thw_max, hw_padded)
    t -= t % 128
    while t >= 128:
        if hw_padded % t == 0:
            return t
        t -= 128
    return 128


def direction_block(x_nchw, wc, bc, w1, w2, *, hw_byte_budget=4 << 20):
    """x_nchw: (N, C, H, W) f32.  wc/w1: (planes, C), w2: (planes, planes), bc: (planes,).

    Returns (N, planes, H, W), matching PyTorch DirectionBlock.forward.
    """
    N, C, H, W = x_nchw.shape
    planes = wc.shape[0]
    HW = H * W

    # --- channel attention precomputed in plain JAX (a few hundred FLOPs) ---
    pooled = jnp.mean(x_nchw.astype(jnp.float32), axis=(2, 3))   # (N, C)
    h = jnp.maximum(pooled @ w1.T, 0.0)                          # (N, planes)
    u = jax.nn.sigmoid(h @ w2.T)                                 # (N, planes)

    # Free reshape (no transpose): NCHW -> (N, C, HW).
    x = x_nchw.reshape(N, C, HW)

    # Pad HW up to a multiple of 128: keeps stores lane-dense / unmasked and the
    # HW-tiled pipeline active even for awkward spatial sizes.  Padded columns
    # are sliced off after the kernel (their garbage values never escape).
    HW_p = ((HW + 127) // 128) * 128
    if HW_p != HW:
        x = jnp.pad(x, ((0, 0), (0, 0), (0, HW_p - HW)))

    THW = _pick_hw_tile(HW_p, C, planes, hw_byte_budget)
    n_hw_tiles = HW_p // THW

    u3 = u.reshape(N, planes, 1)
    bc2 = bc.reshape(planes, 1)

    # Scoped-VMEM limit: double-buffered x+out tiles + weights, with headroom.
    # Raises v5e's 16 MiB default where needed; capped well under v7x's 64 MiB.
    per_step_bytes = (C + planes) * THW * 4
    vmem_limit = int(min(max(4 * per_step_bytes + (2 << 20), 8 << 20), 30 << 20))

    cost = pl.CostEstimate(
        flops=2 * N * HW_p * C * planes,
        transcendentals=0,
        bytes_accessed=4 * (N * HW_p * (C + planes)
                            + planes * C + planes + N * planes),
    )

    out = pl.pallas_call(
        _direction_scale_kernel,
        out_shape=jax.ShapeDtypeStruct((N, planes, HW_p), jnp.float32),
        grid_spec=pltpu.PrefetchScalarGridSpec(
            num_scalar_prefetch=0,
            # HW-tile axis first: balanced megacore split on v7x even for N=1/odd N.
            grid=(n_hw_tiles, N),
            in_specs=[
                pl.BlockSpec((1, C, THW), lambda t, n: (n, 0, t)),
                pl.BlockSpec((planes, C), lambda t, n: (0, 0)),
                pl.BlockSpec((planes, 1), lambda t, n: (0, 0)),
                pl.BlockSpec((1, planes, 1), lambda t, n: (n, 0, 0)),
            ],
            out_specs=pl.BlockSpec((1, planes, THW), lambda t, n: (n, 0, t)),
        ),
        compiler_params=pltpu.CompilerParams(
            dimension_semantics=("parallel", "parallel"),
            vmem_limit_bytes=vmem_limit,
        ),
        cost_estimate=cost,
    )(x, wc, bc2, u3)

    if HW_p != HW:
        out = out[:, :, :HW]
    # (N, planes, HW) -> (N, planes, H, W): free reshape.
    return out.reshape(N, planes, H, W)


def direction_block_ref(x_nchw, wc, bc, w1, w2):
    """Pure-JAX reference mirroring the PyTorch module."""
    pooled = jnp.mean(x_nchw, axis=(2, 3))                       # (N, C)
    h = jnp.maximum(pooled @ w1.T, 0.0)                          # (N, planes)
    u = jax.nn.sigmoid(h @ w2.T)                                 # (N, planes)
    conv = jnp.einsum("nchw,pc->nphw", x_nchw, wc) + bc[None, :, None, None]
    return conv * u[:, :, None, None]


if __name__ == "__main__":
    N, C_in, H, W = 2, 4, 16, 16
    planes = 9

    key = jax.random.PRNGKey(0)
    kx, kwc, kbc, kw1, kw2 = jax.random.split(key, 5)

    x = jax.random.normal(kx, (N, C_in, H, W), dtype=jnp.float32)
    # Deterministic "synthetic checkpoint" parameters in PyTorch (out, in) layout.
    wc = jax.random.normal(kwc, (planes, C_in), dtype=jnp.float32) * 0.1   # self.conv weight
    bc = jax.random.normal(kbc, (planes,), dtype=jnp.float32) * 0.1        # self.conv bias
    w1 = jax.random.normal(kw1, (planes, C_in), dtype=jnp.float32) * 0.1   # ca[0] weight (no bias)
    w2 = jax.random.normal(kw2, (planes, planes), dtype=jnp.float32) * 0.1 # ca[2] weight (no bias)

    out = jax.block_until_ready(direction_block(x, wc, bc, w1, w2))
    ref = direction_block_ref(x, wc, bc, w1, w2)
    assert out.shape == (N, planes, H, W)
    assert jnp.allclose(out, ref, atol=1e-5, rtol=1e-5), "mismatch vs reference"

    # Also exercise the non-multiple-of-128 HW pad/slice path with a tiny input.
    x2 = jax.random.normal(kx, (1, C_in, 10, 10), dtype=jnp.float32)
    out2 = jax.block_until_ready(direction_block(x2, wc, bc, w1, w2))
    ref2 = direction_block_ref(x2, wc, bc, w1, w2)
    assert out2.shape == (1, planes, 10, 10)
    assert jnp.allclose(out2, ref2, atol=1e-5, rtol=1e-5), "mismatch vs reference (padded HW)"

    print("KERNEL_OK")
</pallas_src>

<mosaic_0001>
module attributes {stable_mosaic.version = 11 : i64} {
  func.func @_direction_scale_kernel(%arg0: i32, %arg1: i32, %arg2: memref<1x4x256xf32, #tpu.memory_space<vmem>>, %arg3: memref<9x4xf32, #tpu.memory_space<vmem>>, %arg4: memref<9x1xf32, #tpu.memory_space<vmem>>, %arg5: memref<1x9x1xf32, #tpu.memory_space<vmem>>, %arg6: memref<1x9x256xf32, #tpu.memory_space<vmem>>) attributes {dimension_semantics = [#tpu.dimension_semantics<parallel>, #tpu.dimension_semantics<parallel>], iteration_bounds = array<i64: 1, 2>, scalar_prefetch = 0 : i64, scratch_operands = 0 : i64, tpu.core_type = #tpu.core_type<tc>, window_params = [{transform_indices = @transform_0, window_bounds = array<i64: 1, 4, 256>}, {pipeline_mode = #tpu.pipeline_mode<synchronous>, transform_indices = @transform_1, window_bounds = array<i64: 9, 4>}, {pipeline_mode = #tpu.pipeline_mode<synchronous>, transform_indices = @transform_2, window_bounds = array<i64: 9, 1>}, {transform_indices = @transform_3, window_bounds = array<i64: 1, 9, 1>}, {transform_indices = @transform_4, window_bounds = array<i64: 1, 9, 256>}]} {
    %c0 = arith.constant 0 : index
    %c0_0 = arith.constant 0 : index
    %c0_1 = arith.constant 0 : index
    %0 = vector.load %arg2[%c0, %c0_0, %c0_1] : memref<1x4x256xf32, #tpu.memory_space<vmem>>, vector<1x4x256xf32>
    %1 = vector.shape_cast %0 : vector<1x4x256xf32> to vector<4x256xf32>
    %c0_2 = arith.constant 0 : index
    %c0_3 = arith.constant 0 : index
    %2 = vector.load %arg3[%c0_2, %c0_3] : memref<9x4xf32, #tpu.memory_space<vmem>>, vector<9x4xf32>
    %cst = arith.constant dense<0.000000e+00> : vector<9x256xf32>
    %3 = tpu.matmul %2, %1, %cst {dimension_numbers = #tpu.dot_dimension_numbers<[1], [0], [0], [1], [0, 0, 1, 1], [], []>} : vector<9x4xf32>, vector<4x256xf32>, vector<9x256xf32> -> vector<9x256xf32>
    %c0_4 = arith.constant 0 : index
    %c0_5 = arith.constant 0 : index
    %4 = vector.load %arg4[%c0_4, %c0_5] : memref<9x1xf32, #tpu.memory_space<vmem>>, vector<9x1xf32>
    %5 = vector.broadcast %4 : vector<9x1xf32> to vector<9x256xf32>
    %6 = arith.addf %3, %5 : vector<9x256xf32>
    %c0_6 = arith.constant 0 : index
    %c0_7 = arith.constant 0 : index
    %c0_8 = arith.constant 0 : index
    %7 = vector.load %arg5[%c0_6, %c0_7, %c0_8] : memref<1x9x1xf32, #tpu.memory_space<vmem>>, vector<1x9x1xf32>
    %8 = vector.shape_cast %7 : vector<1x9x1xf32> to vector<9x1xf32>
    %9 = vector.broadcast %8 : vector<9x1xf32> to vector<9x256xf32>
    %10 = arith.mulf %6, %9 : vector<9x256xf32>
    %c0_9 = arith.constant 0 : index
    %c0_10 = arith.constant 0 : index
    %c0_11 = arith.constant 0 : index
    %11 = vector.load %arg6[%c0_9, %c0_10, %c0_11] : memref<1x9x256xf32, #tpu.memory_space<vmem>>, vector<1x9x256xf32>
    %12 = vector.shape_cast %11 : vector<1x9x256xf32> to vector<9x256xf32>
    %13 = vector.shape_cast %10 : vector<9x256xf32> to vector<1x9x256xf32>
    tpu.vector_store %arg6[%c0_9, %c0_10, %c0_11], %13 {strides = array<i32>} : memref<1x9x256xf32, #tpu.memory_space<vmem>>, vector<1x9x256xf32>,
    return
  }
  func.func @transform_0(%arg0: i32, %arg1: i32) -> (i32, i32, i32) {
    %c0_i32 = arith.constant 0 : i32
    %c0_i32_0 = arith.constant 0 : i32
    return %arg1, %c0_i32, %arg0 : i32, i32, i32
  }
  func.func @transform_1(%arg0: i32, %arg1: i32) -> (i32, i32) {
    %c0_i32 = arith.constant 0 : i32
    %c0_i32_0 = arith.constant 0 : i32
    %c0_i32_1 = arith.constant 0 : i32
    return %c0_i32, %c0_i32_0 : i32, i32
  }
  func.func @transform_2(%arg0: i32, %arg1: i32) -> (i32, i32) {
    %c0_i32 = arith.constant 0 : i32
    %c0_i32_0 = arith.constant 0 : i32
    %c0_i32_1 = arith.constant 0 : i32
    return %c0_i32, %c0_i32_0 : i32, i32
  }
  func.func @transform_3(%arg0: i32, %arg1: i32) -> (i32, i32, i32) {
    %c0_i32 = arith.constant 0 : i32
    %c0_i32_0 = arith.constant 0 : i32
    %c0_i32_1 = arith.constant 0 : i32
    return %arg1, %c0_i32, %c0_i32_0 : i32, i32, i32
  }
  func.func @transform_4(%arg0: i32, %arg1: i32) -> (i32, i32, i32) {
    %c0_i32 = arith.constant 0 : i32
    %c0_i32_0 = arith.constant 0 : i32
    return %arg1, %c0_i32, %arg0 : i32, i32, i32
  }
}

</mosaic_0001>

<bundles_post_ra>
// kernel: tpu_custom_call.1
= control target key start
LH: loop header
LB: loop body
LE: loop exit
PB: predicated region body
PF: predicated region fallthrough
CT: control target
= control target key end

     0   :  { %s584_s15 = smov 0   ;;  %s586_s16 = smov 0   ;;  %s637_s0 = inlined_call_operand.vmem [shape: f32[2,4,256], index: 0, kind: input, shape index: {}]   ;;  %s638_s1 = inlined_call_operand.vmem [shape: f32[9,4], index: 1, kind: input, shape index: {}]   ;;  %s639_s2 = inlined_call_operand.vmem [shape: f32[9,1], index: 2, kind: input, shape index: {}]   ;;  %s640_s3 = inlined_call_operand.vmem [shape: f32[2,9,1], index: 3, kind: input, shape index: {}]   ;;  %s641_s4 = inlined_call_operand.vmem [shape: f32[2,9,256], index: 4, kind: output, shape index: {}]  }
   0x1   :  { %s588_s17 = smov 0  }
   0x2 LB: > { %s23_s18 = sadd.s32 1, %s551_s16  ;;  %p486_p0 = scmp.ge.s32.totalorder %s555_s17, 1  ;;  %s555_s17 = sphi %s588_s17, %s14_s17   ;;  %s551_s16 = sphi %s586_s16, %s643_s16   ;;  %s547_s15 = sphi %s584_s15, %s642_s15  }
   0x3   : > { %p24_p1 = scmp.ge.s32.totalorder %s23_s18, 2  ;;  %p193_p2 = scmp.lt.s32.totalorder %s555_s17, 3 }
   0x5   : > { %s645_s18 = smov (%p24_p1, %s23_s18), 0  ;;  %p194_p3 = pnand %p486_p0, %p193_p2 }
   0x6   : > { %p233_p4 = scmp.lt.s32.totalorder (!%p194_p3), %s547_s15, 1  ;;  %v557_v0 = vmov (!%p194_p3), 0.0   ;;  %v260_v1 = vld [vmem:[%s639_s2] sm:$0xff] (!%p194_p3)  ;;  %v558_v2 = vmov (!%p194_p3), 0   ;;  %v261_v3 = vld [vmem:[%s639_s2 + $0x8] sm:$0x1] (!%p194_p3) }
   0x7   : > { %197 = sbr.rel (%p194_p3) target bundleno = 240 (0xf0), region = 36  ;;  %350 = vmatprep.mubr.f32.mxu0 (!%p194_p3), %v557_v0  ;;  %356 = vmatprep.mubr.f32.mxu1 (!%p194_p3), %v557_v0  ;;  %vm281_vm0 = vcmask (!%p194_p3), 1043456   ;;  %v258_v7 = vld [vmem:[%s638_s1] sm:$0xff] (!%p194_p3)  ;;  %vm274_vm1 = vcmask (!%p194_p3), 31744   ;;  %v259_v8 = vld [vmem:[%s638_s1 + $0x8] sm:$0x1] (!%p194_p3) }
   0x8   : > { %530 = vset.pattern.permute.xlu0 (!%p194_p3), %v558_v2  ;;  %531 = vset.pattern.permute.xlu1 (!%p194_p3), %v558_v2 }
   0x9   : > { %264 = vperm.xlu0 (!%p194_p3), %530, %v260_v1  }
   0xd   : > { %269 = vperm.xlu0 (!%p194_p3), %530, %v261_v3  }
   0xe   : > { %s647_s15 = smov (!%p233_p4, %s547_s15), 1 }
   0xf   : > { %s499_s21 = sshll.u32 %s647_s15, 3  ;;  %s500_s22 = sshll.u32 %s647_s15, 4 }
  0x10   : > { %s240_s27 = scalar_lea.vmem %s637_s0, %s499_s21  ;;  %s246_s30 = scalar_lea.vmem %s640_s3, %s500_s22 }
  0x11   : > { %v257_v4 = vld [vmem:[%s240_s27] sm:$0xff]  ;;  %v364_v9 = vld [vmem:[%s246_s30 + $0x8] sm:$0x1]  ;;  %s501_s9 = sshll.u32 %s647_s15, 5 }
  0x12   : > { %v363_v5 = vld [vmem:[%s246_s30] sm:$0xff]  ;;  %v273_v6 = vcombine.high %v257_v4, %v257_v4  ;;  %s255_s12 = scalar_lea.vmem %s641_s4, %s501_s9 }
  0x13   : > { %367 = vperm.xlu1 %531, %v363_v5  }
  0x14   : > { %493 = vmatprep.subr.msk.mxu0 %vm281_vm0, %v273_v6  ;;  %502 = vmatprep.subr.msk.mxu1 %vm281_vm0, %v273_v6 }
  0x15   : > { %494 = vmatpush1.msk.msra.mxu0 %vm281_vm0, %v257_v4  ;;  %503 = vmatpush1.msk.msra.mxu1 %vm281_vm0, %v257_v4 }
  0x16   : > { %495 = vmatmul.mubr.msk.f32.vlgmr.msra.gmra.mrb[0].mxu0 %vm274_vm1, %v258_v7  ;;  %496 = vmatmul.mubr.msk.f32.vlgmr.msra.gmra.mrb[0].mxu1 %vm274_vm1, %v259_v8 }
  0x17   : > { %372 = vperm.xlu1 %531, %v364_v9  }
  0x88   : > { %v265_v10 = vpop.permute.xlu0 %264 }
  0x8c   : > { %v270_v12 = vpop.permute.xlu0 %269 }
  0x92   : > { %v368_v11 = vpop.permute.xlu1 %367 }
  0x96   : > { %v373_v19 = vpop.permute.xlu1 %372 }
  0xe9   : > { %v352_v13 = vpop.f32.mrb[0].mxu0  ;;  %v358_v14 = vpop.f32.mrb[0].mxu1 }
  0xea   : > { %v353_v15 = vadd.f32 %v352_v13, %v265_v10  ;;  %v359_v16 = vadd.f32 %v358_v14, %v270_v12  ;;  %v354_v17 = vpop.f32.mrb[1].mxu0  ;;  %v360_v18 = vpop.f32.mrb[1].mxu1 }
  0xeb   : > { %v355_v20 = vadd.f32 %v354_v17, %v265_v10  ;;  %v361_v21 = vadd.f32 %v360_v18, %v270_v12 }
  0xec   : > { %v375_v22 = vmul.f32 %v368_v11, %v353_v15  ;;  %v377_v23 = vmul.f32 %v373_v19, %v359_v16 }
  0xed   : > { %v376_v24 = vmul.f32 %v368_v11, %v355_v20  ;;  %v378_v25 = vmul.f32 %v373_v19, %v361_v21 }
  0xee   : > { %379 = vst [vmem:[%s255_s12] sm:$0xff] %v375_v22  ;;  %381 = vst [vmem:[%s255_s12 + $0x10] sm:$0x1] %v377_v23 }
  0xef   : > { %380 = vst [vmem:[%s255_s12 + $0x8] sm:$0xff] %v376_v24  ;;  %382 = vst [vmem:[%s255_s12 + $0x18] sm:$0x1] %v378_v25 }
  0xf0 PF: > { %s14_s17 = sadd.s32 1, %s555_s17   ;;  %s642_s15 = smov %s551_s16 }
  0xf1   : > { %p11_p5 = scmp.ge.s32.totalorder %s14_s17, 4   ;;  %s643_s16 = smov %s645_s18 }
  0xf3   :  { %13 = sbr.rel (!%p11_p5) target bundleno = 2 (0x2), region = 69 }

</bundles_post_ra>
